<compile_context>
chip_gen: v5e
topology: v5e:2x2
jax: 0.10.0
libtpu: 0.0.40
codegen_flags: <defaults>
</compile_context>

<pallas_src>
import jax
import jax.numpy as jnp
from jax.experimental import pallas as pl
from jax.experimental.pallas import tpu as pltpu


def _round_up(n: int, m: int) -> int:
    return (n + m - 1) // m * m


def mlp_kernel(x_ref, w1_ref, b1_ref, w2_ref, b2_ref, o_ref):
    # Linear 1 + ReLU + Linear 2, fully fused in VMEM.  Operands are tiny, so both dots are a
    # single (internally padded) MXU pass; accumulate in f32.
    h = jnp.dot(x_ref[...], w1_ref[...], preferred_element_type=jnp.float32)
    h = jnp.maximum(h + b1_ref[...], 0.0)  # (1,H) broadcast against (tb,H)
    y = jnp.dot(h, w2_ref[...], preferred_element_type=jnp.float32) + b2_ref[...]
    o_ref[...] = y.astype(o_ref.dtype)


def net_forward(x, w1, b1, w2, b2, *, block_b: int = 1024):
    """Pallas forward pass of Net.

    x:  (B, n_inputs)        float32
    w1: (n_inputs, hidden)   float32   (transposed vs. torch's (hidden, n_inputs))
    b1: (hidden,) or (1, hidden)
    w2: (hidden, n_classes)  float32
    b2: (n_classes,) or (1, n_classes)
    returns (B, n_classes)   float32 logits.
    """
    B, n_in = x.shape
    hidden = w1.shape[1]
    n_classes = w2.shape[1]

    b1 = jnp.reshape(b1, (1, hidden)).astype(jnp.float32)
    b2 = jnp.reshape(b2, (1, n_classes)).astype(jnp.float32)

    # Batch tile: multiple of 8 (f32 sublane).  Capped at ceil(B/2) (rounded to 8) so large
    # batches give a grid of >= 2 steps for v7x's two TensorCores; capped at block_b to bound
    # VMEM (still tiny: tb x n_in and tb x n_classes tiles).
    tb = min(block_b, _round_up(B, 8), max(_round_up(pl.cdiv(B, 2), 8), 8))
    grid = (pl.cdiv(B, tb),)  # non-divisible B handled by masked tail-block stores

    return pl.pallas_call(
        mlp_kernel,
        out_shape=jax.ShapeDtypeStruct((B, n_classes), jnp.float32),
        grid=grid,
        in_specs=[
            # x: streamed per grid step, true width (last dim == full array dim).
            pl.BlockSpec((tb, n_in), lambda i: (i, 0)),
            # Weights/biases: constant block index -> DMA'd once, VMEM-resident across steps.
            pl.BlockSpec((n_in, hidden), lambda i: (0, 0)),
            pl.BlockSpec((1, hidden), lambda i: (0, 0)),
            pl.BlockSpec((hidden, n_classes), lambda i: (0, 0)),
            pl.BlockSpec((1, n_classes), lambda i: (0, 0)),
        ],
        # Output emitted at true width (B, n_classes); no padded write, no post-slice pass.
        out_specs=pl.BlockSpec((tb, n_classes), lambda i: (i, 0)),
        compiler_params=pltpu.CompilerParams(
            # Batch steps are independent -> shardable across v7x's 2 TensorCores.
            dimension_semantics=("parallel",),
        ),
    )(x, w1, b1, w2, b2)


def init_params(key, n_inputs, hidden, n_classes):
    # Deterministic init mimicking torch.nn.Linear's uniform(-1/sqrt(fan_in), 1/sqrt(fan_in)).
    k1, k2, k3, k4 = jax.random.split(key, 4)
    lim1 = 1.0 / jnp.sqrt(jnp.float32(n_inputs))
    lim2 = 1.0 / jnp.sqrt(jnp.float32(hidden))
    w1 = jax.random.uniform(k1, (n_inputs, hidden), jnp.float32, -lim1, lim1)
    b1 = jax.random.uniform(k2, (1, hidden), jnp.float32, -lim1, lim1)
    w2 = jax.random.uniform(k3, (hidden, n_classes), jnp.float32, -lim2, lim2)
    b2 = jax.random.uniform(k4, (1, n_classes), jnp.float32, -lim2, lim2)
    return w1, b1, w2, b2


def _reference(x, w1, b1, w2, b2):
    return jnp.maximum(x @ w1 + b1, 0.0) @ w2 + b2


if __name__ == "__main__":
    # Shapes consistent with the module: n_inputs=8, hidden=32, n_classes=4.
    n_inputs, hidden, n_classes = 8, 32, 4

    key = jax.random.PRNGKey(0)
    kx, kp, kx2, kx3 = jax.random.split(key, 4)
    w1, b1, w2, b2 = init_params(kp, n_inputs, hidden, n_classes)

    # Small batch (B=8): single grid step.
    x_small = jax.random.normal(kx, (8, n_inputs), jnp.float32)
    out_small = jax.block_until_ready(net_forward(x_small, w1, b1, w2, b2))
    ref_small = _reference(x_small, w1, b1, w2, b2)
    assert out_small.shape == (8, n_classes)
    assert jnp.allclose(out_small, ref_small, atol=1e-5, rtol=1e-5)

    # Larger batch (B=1024): grid of 2 steps (tb=512), weights held resident across steps.
    x_big = jax.random.normal(kx2, (1024, n_inputs), jnp.float32)
    out_big = jax.block_until_ready(net_forward(x_big, w1, b1, w2, b2))
    ref_big = _reference(x_big, w1, b1, w2, b2)
    assert out_big.shape == (1024, n_classes)
    assert jnp.allclose(out_big, ref_big, atol=1e-5, rtol=1e-5)

    # Non-divisible batch (B=200): exercises the masked tail block (no batch padding in HBM).
    x_tail = jax.random.normal(kx3, (200, n_inputs), jnp.float32)
    out_tail = jax.block_until_ready(net_forward(x_tail, w1, b1, w2, b2))
    ref_tail = _reference(x_tail, w1, b1, w2, b2)
    assert out_tail.shape == (200, n_classes)
    assert jnp.allclose(out_tail, ref_tail, atol=1e-5, rtol=1e-5)

    print("KERNEL_OK")
</pallas_src>

<mosaic_0001>
module attributes {stable_mosaic.version = 11 : i64} {
  func.func @mlp_kernel(%arg0: i32, %arg1: memref<8x8xf32, #tpu.memory_space<vmem>>, %arg2: memref<8x32xf32, #tpu.memory_space<vmem>>, %arg3: memref<1x32xf32, #tpu.memory_space<vmem>>, %arg4: memref<32x4xf32, #tpu.memory_space<vmem>>, %arg5: memref<1x4xf32, #tpu.memory_space<vmem>>, %arg6: memref<8x4xf32, #tpu.memory_space<vmem>>) attributes {dimension_semantics = [#tpu.dimension_semantics<parallel>], iteration_bounds = array<i64: 1>, scalar_prefetch = 0 : i64, scratch_operands = 0 : i64, tpu.core_type = #tpu.core_type<tc>, window_params = [{transform_indices = @transform_0, window_bounds = array<i64: 8, 8>}, {pipeline_mode = #tpu.pipeline_mode<synchronous>, transform_indices = @transform_1, window_bounds = array<i64: 8, 32>}, {pipeline_mode = #tpu.pipeline_mode<synchronous>, transform_indices = @transform_2, window_bounds = array<i64: 1, 32>}, {pipeline_mode = #tpu.pipeline_mode<synchronous>, transform_indices = @transform_3, window_bounds = array<i64: 32, 4>}, {pipeline_mode = #tpu.pipeline_mode<synchronous>, transform_indices = @transform_4, window_bounds = array<i64: 1, 4>}, {transform_indices = @transform_5, window_bounds = array<i64: 8, 4>}]} {
    %c0 = arith.constant 0 : index
    %c0_0 = arith.constant 0 : index
    %0 = vector.load %arg1[%c0, %c0_0] : memref<8x8xf32, #tpu.memory_space<vmem>>, vector<8x8xf32>
    %c0_1 = arith.constant 0 : index
    %c0_2 = arith.constant 0 : index
    %1 = vector.load %arg2[%c0_1, %c0_2] : memref<8x32xf32, #tpu.memory_space<vmem>>, vector<8x32xf32>
    %cst = arith.constant dense<0.000000e+00> : vector<8x32xf32>
    %2 = tpu.matmul %0, %1, %cst {dimension_numbers = #tpu.dot_dimension_numbers<[1], [0], [0], [1], [0, 0, 1, 1], [], []>} : vector<8x8xf32>, vector<8x32xf32>, vector<8x32xf32> -> vector<8x32xf32>
    %c0_3 = arith.constant 0 : index
    %c0_4 = arith.constant 0 : index
    %3 = vector.load %arg3[%c0_3, %c0_4] : memref<1x32xf32, #tpu.memory_space<vmem>>, vector<1x32xf32>
    %4 = vector.broadcast %3 : vector<1x32xf32> to vector<8x32xf32>
    %5 = arith.addf %2, %4 : vector<8x32xf32>
    %cst_5 = arith.constant 0.000000e+00 : f32
    %6 = vector.broadcast %cst_5 : f32 to vector<8x32xf32>
    %7 = arith.maximumf %5, %6 : vector<8x32xf32>
    %c0_6 = arith.constant 0 : index
    %c0_7 = arith.constant 0 : index
    %8 = vector.load %arg4[%c0_6, %c0_7] : memref<32x4xf32, #tpu.memory_space<vmem>>, vector<32x4xf32>
    %cst_8 = arith.constant dense<0.000000e+00> : vector<8x4xf32>
    %9 = tpu.matmul %7, %8, %cst_8 {dimension_numbers = #tpu.dot_dimension_numbers<[1], [0], [0], [1], [0, 0, 1, 1], [], []>} : vector<8x32xf32>, vector<32x4xf32>, vector<8x4xf32> -> vector<8x4xf32>
    %c0_9 = arith.constant 0 : index
    %c0_10 = arith.constant 0 : index
    %10 = vector.load %arg5[%c0_9, %c0_10] : memref<1x4xf32, #tpu.memory_space<vmem>>, vector<1x4xf32>
    %11 = vector.broadcast %10 : vector<1x4xf32> to vector<8x4xf32>
    %12 = arith.addf %9, %11 : vector<8x4xf32>
    %c0_11 = arith.constant 0 : index
    %c0_12 = arith.constant 0 : index
    %13 = vector.load %arg6[%c0_11, %c0_12] : memref<8x4xf32, #tpu.memory_space<vmem>>, vector<8x4xf32>
    tpu.vector_store %arg6[%c0_11, %c0_12], %12 {strides = array<i32>} : memref<8x4xf32, #tpu.memory_space<vmem>>, vector<8x4xf32>,
    return
  }
  func.func @transform_0(%arg0: i32) -> (i32, i32) {
    %c0_i32 = arith.constant 0 : i32
    %c0_i32_0 = arith.constant 0 : i32
    return %arg0, %c0_i32 : i32, i32
  }
  func.func @transform_1(%arg0: i32) -> (i32, i32) {
    %c0_i32 = arith.constant 0 : i32
    %c0_i32_0 = arith.constant 0 : i32
    %c0_i32_1 = arith.constant 0 : i32
    return %c0_i32, %c0_i32_0 : i32, i32
  }
  func.func @transform_2(%arg0: i32) -> (i32, i32) {
    %c0_i32 = arith.constant 0 : i32
    %c0_i32_0 = arith.constant 0 : i32
    %c0_i32_1 = arith.constant 0 : i32
    return %c0_i32, %c0_i32_0 : i32, i32
  }
  func.func @transform_3(%arg0: i32) -> (i32, i32) {
    %c0_i32 = arith.constant 0 : i32
    %c0_i32_0 = arith.constant 0 : i32
    %c0_i32_1 = arith.constant 0 : i32
    return %c0_i32, %c0_i32_0 : i32, i32
  }
  func.func @transform_4(%arg0: i32) -> (i32, i32) {
    %c0_i32 = arith.constant 0 : i32
    %c0_i32_0 = arith.constant 0 : i32
    %c0_i32_1 = arith.constant 0 : i32
    return %c0_i32, %c0_i32_0 : i32, i32
  }
  func.func @transform_5(%arg0: i32) -> (i32, i32) {
    %c0_i32 = arith.constant 0 : i32
    %c0_i32_0 = arith.constant 0 : i32
    return %arg0, %c0_i32 : i32, i32
  }
}

</mosaic_0001>

<bundles_post_ra>
// kernel: tpu_custom_call.1
= control target key start
LH: loop header
LB: loop body
LE: loop exit
PB: predicated region body
PF: predicated region fallthrough
CT: control target
= control target key end

     0   :  { %vm26_vm0 = vcmask 64512   ;;  %vm59_vm1 = vcmask 261120   ;;  %vm83_vm2 = vcmask 31744   ;;  %s150_s1 = inlined_call_operand.vmem [shape: f32[8,32], index: 1, kind: input, shape index: {}]   ;;  %s151_s0 = inlined_call_operand.vmem [shape: f32[8,8], index: 0, kind: input, shape index: {}]   ;;  %s152_s3 = inlined_call_operand.vmem [shape: f32[32,4], index: 3, kind: input, shape index: {}]   ;;  %s153_s2 = inlined_call_operand.vmem [shape: f32[1,32], index: 2, kind: input, shape index: {}]   ;;  %s154_s4 = inlined_call_operand.vmem [shape: f32[1,4], index: 4, kind: input, shape index: {}]   ;;  %s155_s5 = inlined_call_operand.vmem [shape: f32[8,4], index: 5, kind: output, shape index: {}]  }
   0x1   :  { %v21_v0 = vld [vmem:[%s150_s1] sm:$0xff]  ;;  %v54_v2 = vld [vmem:[%s152_s3 + $0x18] sm:$0xff]  ;;  %v53_v3 = vld [vmem:[%s152_s3 + $0x10] sm:$0xff] }
   0x2   :  { %v20_v1 = vld [vmem:[%s151_s0] sm:$0xff]  ;;  %45 = vmatpush.msra.mxu0 %v21_v0  ;;  %75 = vmatpush.msra.mxu1 %v54_v2  ;;  %v52_v4 = vld [vmem:[%s152_s3 + $0x8] sm:$0xff] }
   0x3   :  { %89 = vmatmul.msk.f32.vlgmr.msra.gmra.mxu0 %vm26_vm0, %v20_v1  ;;  %v51_v5 = vld [vmem:[%s152_s3] sm:$0xff] }
   0x4   :  { %76 = vmatpush.msra.mxu1 %v53_v3  ;;  %v91_v6 = vld [vmem:[%s153_s2] ss:$0 sm:$0xff] }
   0x5   :  { %v92_v10 = vld [vmem:[%s154_s4] ss:$0 sm:$0xff] }
   0x6   :  { %77 = vmatpush.msra.mxu1 %v52_v4 }
   0x8   :  { %78 = vmatpush.msra.mxu1 %v51_v5 }
  0x80   :  { %v47_v7 = vpop.f32.mrf.mxu0 }
  0x81   :  { %v48_v8 = vadd.f32 %v91_v6, %v47_v7 }
  0x83   :  { %v50_v9 = vmax.f32 %v48_v8, 0.0 }
  0x85   :  { %90 = vmatmul.msk.f32.vlgmr.msra.gmra.mxu1 %vm59_vm1, %v50_v9 }
 0x102   :  { %v80_v11 = vpop.f32.mrf.mxu1 }
 0x103   :  { %v81_v12 = vadd.f32 %v92_v10, %v80_v11 }
 0x105   :  { %84 = vst.msk [vmem:[%s155_s5] sm:$0xff] %vm83_vm2, %v81_v12 }

</bundles_post_ra>
